<compile_context>
chip_gen: v7x
topology: tpu7x:2x2x1
jax: 0.10.0
libtpu: 0.0.40
codegen_flags: <defaults>
</compile_context>

<pallas_src>
import jax
import jax.numpy as jnp
import numpy as np
from jax.experimental import pallas as pl
from jax.experimental.pallas import tpu as pltpu


def inference_net_kernel(x_ref, w_ref, b_ref, u_ref, logits_ref, samples_ref):
    # x_ref: (Bp, Dp) f32
    # w_ref: (L, Dp, Dp) f32 — pre-folded so logit = x @ W' + b'
    # b_ref: (L, 1, Dp) f32 — pre-folded bias
    # u_ref: (L, Bp, Dp) f32 — per-layer uniforms (padded lanes = 1.0)
    # logits_ref / samples_ref: (L, Bp, Dp) f32
    num_layers = w_ref.shape[0]
    x = x_ref[...]
    for l in range(num_layers):  # short static loop: fully unrolled, sequential chain
        logit = jnp.dot(x, w_ref[l], preferred_element_type=jnp.float32)
        logit = logit + b_ref[l]
        prob = 1.0 / (1.0 + jnp.exp(-logit))            # sigmoid (EUP slot)
        x = (prob > u_ref[l]).astype(jnp.float32)       # Bernoulli sample
        logits_ref[l] = logit.astype(logits_ref.dtype)
        samples_ref[l] = x.astype(samples_ref.dtype)


def _pad_to(a, target_shape, value=0.0):
    pads = [(0, t - s) for s, t in zip(a.shape, target_shape)]
    return jnp.pad(a, pads, constant_values=value)


def inference_net_forward(x, weights, biases, uniforms):
    """InferenceNet.forward with nn.Linear sub-modules.

    x:        [B, D]     input
    weights:  [L, D, D]  PyTorch nn.Linear layout (out_features, in_features)
    biases:   [L, D]
    uniforms: [L, B, D]  the per-layer uniforms u (≡ torch.rand_like(logit))

    Returns (logits, samples), each stacked as [L, B, D] float32.
    """
    L, Dout, Din = weights.shape
    assert Din == Dout, "chained stochastic layers need matching in/out dims"
    D = Din
    B = x.shape[0]

    # Fold the (2*x - 1) affine into the parameters:
    #   (2x - 1) @ W_t + b == x @ (2*W_t) + (b - colsum(W_t))
    w_t = jnp.swapaxes(weights, 1, 2)                 # [L, Din, Dout] for x @ W
    w_f = (2.0 * w_t).astype(jnp.float32)
    b_f = (biases - jnp.sum(w_t, axis=1)).astype(jnp.float32)   # [L, Dout]

    # Pad to the vreg tile so matmuls and stores are lane/sublane dense.
    Dp = pl.cdiv(D, 128) * 128
    Bp = pl.cdiv(B, 8) * 8
    x_p = _pad_to(x.astype(jnp.float32), (Bp, Dp))
    w_p = _pad_to(w_f, (L, Dp, Dp))
    b_p = _pad_to(b_f, (L, Dp)).reshape(L, 1, Dp)
    # Padded lanes get u = 1.0 so their samples are exactly 0
    # (sigmoid(0) = 0.5 > 1.0 is False) and never pollute anything.
    u_p = _pad_to(uniforms.astype(jnp.float32), (L, Bp, Dp), value=1.0)

    logits_p, samples_p = pl.pallas_call(
        inference_net_kernel,
        out_shape=(
            jax.ShapeDtypeStruct((L, Bp, Dp), jnp.float32),
            jax.ShapeDtypeStruct((L, Bp, Dp), jnp.float32),
        ),
        in_specs=[
            pl.BlockSpec(memory_space=pltpu.MemorySpace.VMEM),
            pl.BlockSpec(memory_space=pltpu.MemorySpace.VMEM),
            pl.BlockSpec(memory_space=pltpu.MemorySpace.VMEM),
            pl.BlockSpec(memory_space=pltpu.MemorySpace.VMEM),
        ],
        out_specs=(
            pl.BlockSpec(memory_space=pltpu.MemorySpace.VMEM),
            pl.BlockSpec(memory_space=pltpu.MemorySpace.VMEM),
        ),
    )(x_p, w_p, b_p, u_p)

    # Lazy slice back to logical shape (single XLA slice per output, no
    # per-layer Python list of slices).
    return logits_p[:, :B, :D], samples_p[:, :B, :D]


if __name__ == "__main__":
    # 3 stochastic layers, batch 8, hidden 32 (padded to 128 lanes in-wrapper).
    L, B, D = 3, 8, 32

    key = jax.random.PRNGKey(0)
    kx, kw, kb, ku = jax.random.split(key, 4)

    # Input in [0,1) (e.g. pixel intensities) and PyTorch-style Linear params.
    x = jax.random.uniform(kx, (B, D), dtype=jnp.float32)
    bound = 1.0 / np.sqrt(D)
    weights = jax.random.uniform(kw, (L, D, D), jnp.float32, -bound, bound)
    biases = jax.random.uniform(kb, (L, D), jnp.float32, -bound, bound)
    uniforms = jax.random.uniform(ku, (L, B, D), dtype=jnp.float32)

    logits, samples = inference_net_forward(x, weights, biases, uniforms)
    logits = jax.block_until_ready(logits)
    samples = jax.block_until_ready(samples)

    # ---- validation against the PyTorch forward semantics ----
    logits_np = np.asarray(logits, dtype=np.float64)
    samples_np = np.asarray(samples, dtype=np.float64)
    x_np = np.asarray(x, dtype=np.float64)
    w_np = np.asarray(weights, dtype=np.float64)
    b_np = np.asarray(biases, dtype=np.float64)
    u_np = np.asarray(uniforms, dtype=np.float64)

    # Samples must be exactly binary {0, 1}.
    assert np.all((samples_np == 0.0) | (samples_np == 1.0))

    prev_x = x_np
    for l in range(L):
        # logit_l == Linear_l(2*prev_x - 1), with prev_x taken from the
        # kernel's own samples (avoids cascading borderline-threshold flips).
        ref_logit = (2.0 * prev_x - 1.0) @ w_np[l].T + b_np[l]
        np.testing.assert_allclose(logits_np[l], ref_logit, rtol=1e-4, atol=1e-4)
        # sample_l == (sigmoid(logit_l) > u_l); disagreement is only allowed
        # where sigmoid(logit) sits within float tolerance of u.
        p = 1.0 / (1.0 + np.exp(-logits_np[l]))
        expected = (p > u_np[l]).astype(np.float64)
        mismatch = expected != samples_np[l]
        assert np.all(~mismatch | (np.abs(p - u_np[l]) < 1e-5))
        prev_x = samples_np[l]

    print("KERNEL_OK")
</pallas_src>

<mosaic_0001>
module attributes {stable_mosaic.version = 11 : i64} {
  func.func @inference_net_kernel(%arg0: memref<8x128xf32, #tpu.memory_space<vmem>>, %arg1: memref<3x128x128xf32, #tpu.memory_space<vmem>>, %arg2: memref<3x1x128xf32, #tpu.memory_space<vmem>>, %arg3: memref<3x8x128xf32, #tpu.memory_space<vmem>>, %arg4: memref<3x8x128xf32, #tpu.memory_space<vmem>>, %arg5: memref<3x8x128xf32, #tpu.memory_space<vmem>>) attributes {dimension_semantics = [], scalar_prefetch = 0 : i64, scratch_operands = 0 : i64, tpu.core_type = #tpu.core_type<tc>} {
    %c0 = arith.constant 0 : index
    %c0_0 = arith.constant 0 : index
    %0 = vector.load %arg0[%c0, %c0_0] : memref<8x128xf32, #tpu.memory_space<vmem>>, vector<8x128xf32>
    %c0_1 = arith.constant 0 : index
    %c0_2 = arith.constant 0 : index
    %c0_3 = arith.constant 0 : index
    %1 = vector.load %arg1[%c0_1, %c0_2, %c0_3] : memref<3x128x128xf32, #tpu.memory_space<vmem>>, vector<1x128x128xf32>
    %2 = vector.shape_cast %1 : vector<1x128x128xf32> to vector<128x128xf32>
    %cst = arith.constant dense<0.000000e+00> : vector<8x128xf32>
    %3 = tpu.matmul %0, %2, %cst {dimension_numbers = #tpu.dot_dimension_numbers<[1], [0], [0], [1], [0, 0, 1, 1], [], []>} : vector<8x128xf32>, vector<128x128xf32>, vector<8x128xf32> -> vector<8x128xf32>
    %c0_4 = arith.constant 0 : index
    %c0_5 = arith.constant 0 : index
    %c0_6 = arith.constant 0 : index
    %4 = vector.load %arg2[%c0_4, %c0_5, %c0_6] : memref<3x1x128xf32, #tpu.memory_space<vmem>>, vector<1x1x128xf32>
    %5 = vector.shape_cast %4 : vector<1x1x128xf32> to vector<1x128xf32>
    %6 = vector.broadcast %5 : vector<1x128xf32> to vector<8x128xf32>
    %7 = arith.addf %3, %6 : vector<8x128xf32>
    %cst_7 = arith.constant 0.000000e+00 : f32
    %8 = vector.broadcast %cst_7 : f32 to vector<8x128xf32>
    %9 = arith.subf %8, %7 : vector<8x128xf32>
    %10 = math.exp %9 : vector<8x128xf32>
    %cst_8 = arith.constant 1.000000e+00 : f32
    %11 = vector.broadcast %cst_8 : f32 to vector<8x128xf32>
    %12 = arith.addf %11, %10 : vector<8x128xf32>
    %cst_9 = arith.constant 1.000000e+00 : f32
    %13 = vector.broadcast %cst_9 : f32 to vector<8x128xf32>
    %14 = arith.divf %13, %12 : vector<8x128xf32>
    %c0_10 = arith.constant 0 : index
    %c0_11 = arith.constant 0 : index
    %c0_12 = arith.constant 0 : index
    %15 = vector.load %arg3[%c0_10, %c0_11, %c0_12] : memref<3x8x128xf32, #tpu.memory_space<vmem>>, vector<1x8x128xf32>
    %16 = vector.shape_cast %15 : vector<1x8x128xf32> to vector<8x128xf32>
    %17 = arith.cmpf ogt, %14, %16 : vector<8x128xf32>
    %18 = arith.extui %17 : vector<8x128xi1> to vector<8x128xi32>
    %19 = arith.sitofp %18 : vector<8x128xi32> to vector<8x128xf32>
    %c0_13 = arith.constant 0 : index
    %c0_14 = arith.constant 0 : index
    %c0_15 = arith.constant 0 : index
    %20 = vector.load %arg4[%c0_13, %c0_14, %c0_15] : memref<3x8x128xf32, #tpu.memory_space<vmem>>, vector<1x8x128xf32>
    %21 = vector.shape_cast %20 : vector<1x8x128xf32> to vector<8x128xf32>
    %22 = vector.shape_cast %7 : vector<8x128xf32> to vector<1x8x128xf32>
    tpu.vector_store %arg4[%c0_13, %c0_14, %c0_15], %22 {strides = array<i32>} : memref<3x8x128xf32, #tpu.memory_space<vmem>>, vector<1x8x128xf32>,
    %c0_16 = arith.constant 0 : index
    %c0_17 = arith.constant 0 : index
    %c0_18 = arith.constant 0 : index
    %23 = vector.load %arg5[%c0_16, %c0_17, %c0_18] : memref<3x8x128xf32, #tpu.memory_space<vmem>>, vector<1x8x128xf32>
    %24 = vector.shape_cast %23 : vector<1x8x128xf32> to vector<8x128xf32>
    %25 = vector.shape_cast %19 : vector<8x128xf32> to vector<1x8x128xf32>
    tpu.vector_store %arg5[%c0_16, %c0_17, %c0_18], %25 {strides = array<i32>} : memref<3x8x128xf32, #tpu.memory_space<vmem>>, vector<1x8x128xf32>,
    %c1 = arith.constant 1 : index
    %c0_19 = arith.constant 0 : index
    %c0_20 = arith.constant 0 : index
    %26 = vector.load %arg1[%c1, %c0_19, %c0_20] : memref<3x128x128xf32, #tpu.memory_space<vmem>>, vector<1x128x128xf32>
    %27 = vector.shape_cast %26 : vector<1x128x128xf32> to vector<128x128xf32>
    %cst_21 = arith.constant dense<0.000000e+00> : vector<8x128xf32>
    %28 = tpu.matmul %19, %27, %cst_21 {dimension_numbers = #tpu.dot_dimension_numbers<[1], [0], [0], [1], [0, 0, 1, 1], [], []>} : vector<8x128xf32>, vector<128x128xf32>, vector<8x128xf32> -> vector<8x128xf32>
    %c1_22 = arith.constant 1 : index
    %c0_23 = arith.constant 0 : index
    %c0_24 = arith.constant 0 : index
    %29 = vector.load %arg2[%c1_22, %c0_23, %c0_24] : memref<3x1x128xf32, #tpu.memory_space<vmem>>, vector<1x1x128xf32>
    %30 = vector.shape_cast %29 : vector<1x1x128xf32> to vector<1x128xf32>
    %31 = vector.broadcast %30 : vector<1x128xf32> to vector<8x128xf32>
    %32 = arith.addf %28, %31 : vector<8x128xf32>
    %cst_25 = arith.constant 0.000000e+00 : f32
    %33 = vector.broadcast %cst_25 : f32 to vector<8x128xf32>
    %34 = arith.subf %33, %32 : vector<8x128xf32>
    %35 = math.exp %34 : vector<8x128xf32>
    %cst_26 = arith.constant 1.000000e+00 : f32
    %36 = vector.broadcast %cst_26 : f32 to vector<8x128xf32>
    %37 = arith.addf %36, %35 : vector<8x128xf32>
    %cst_27 = arith.constant 1.000000e+00 : f32
    %38 = vector.broadcast %cst_27 : f32 to vector<8x128xf32>
    %39 = arith.divf %38, %37 : vector<8x128xf32>
    %c1_28 = arith.constant 1 : index
    %c0_29 = arith.constant 0 : index
    %c0_30 = arith.constant 0 : index
    %40 = vector.load %arg3[%c1_28, %c0_29, %c0_30] : memref<3x8x128xf32, #tpu.memory_space<vmem>>, vector<1x8x128xf32>
    %41 = vector.shape_cast %40 : vector<1x8x128xf32> to vector<8x128xf32>
    %42 = arith.cmpf ogt, %39, %41 : vector<8x128xf32>
    %43 = arith.extui %42 : vector<8x128xi1> to vector<8x128xi32>
    %44 = arith.sitofp %43 : vector<8x128xi32> to vector<8x128xf32>
    %c1_31 = arith.constant 1 : index
    %c0_32 = arith.constant 0 : index
    %c0_33 = arith.constant 0 : index
    %45 = vector.load %arg4[%c1_31, %c0_32, %c0_33] : memref<3x8x128xf32, #tpu.memory_space<vmem>>, vector<1x8x128xf32>
    %46 = vector.shape_cast %45 : vector<1x8x128xf32> to vector<8x128xf32>
    %47 = vector.shape_cast %32 : vector<8x128xf32> to vector<1x8x128xf32>
    tpu.vector_store %arg4[%c1_31, %c0_32, %c0_33], %47 {strides = array<i32>} : memref<3x8x128xf32, #tpu.memory_space<vmem>>, vector<1x8x128xf32>,
    %c1_34 = arith.constant 1 : index
    %c0_35 = arith.constant 0 : index
    %c0_36 = arith.constant 0 : index
    %48 = vector.load %arg5[%c1_34, %c0_35, %c0_36] : memref<3x8x128xf32, #tpu.memory_space<vmem>>, vector<1x8x128xf32>
    %49 = vector.shape_cast %48 : vector<1x8x128xf32> to vector<8x128xf32>
    %50 = vector.shape_cast %44 : vector<8x128xf32> to vector<1x8x128xf32>
    tpu.vector_store %arg5[%c1_34, %c0_35, %c0_36], %50 {strides = array<i32>} : memref<3x8x128xf32, #tpu.memory_space<vmem>>, vector<1x8x128xf32>,
    %c2 = arith.constant 2 : index
    %c0_37 = arith.constant 0 : index
    %c0_38 = arith.constant 0 : index
    %51 = vector.load %arg1[%c2, %c0_37, %c0_38] : memref<3x128x128xf32, #tpu.memory_space<vmem>>, vector<1x128x128xf32>
    %52 = vector.shape_cast %51 : vector<1x128x128xf32> to vector<128x128xf32>
    %cst_39 = arith.constant dense<0.000000e+00> : vector<8x128xf32>
    %53 = tpu.matmul %44, %52, %cst_39 {dimension_numbers = #tpu.dot_dimension_numbers<[1], [0], [0], [1], [0, 0, 1, 1], [], []>} : vector<8x128xf32>, vector<128x128xf32>, vector<8x128xf32> -> vector<8x128xf32>
    %c2_40 = arith.constant 2 : index
    %c0_41 = arith.constant 0 : index
    %c0_42 = arith.constant 0 : index
    %54 = vector.load %arg2[%c2_40, %c0_41, %c0_42] : memref<3x1x128xf32, #tpu.memory_space<vmem>>, vector<1x1x128xf32>
    %55 = vector.shape_cast %54 : vector<1x1x128xf32> to vector<1x128xf32>
    %56 = vector.broadcast %55 : vector<1x128xf32> to vector<8x128xf32>
    %57 = arith.addf %53, %56 : vector<8x128xf32>
    %cst_43 = arith.constant 0.000000e+00 : f32
    %58 = vector.broadcast %cst_43 : f32 to vector<8x128xf32>
    %59 = arith.subf %58, %57 : vector<8x128xf32>
    %60 = math.exp %59 : vector<8x128xf32>
    %cst_44 = arith.constant 1.000000e+00 : f32
    %61 = vector.broadcast %cst_44 : f32 to vector<8x128xf32>
    %62 = arith.addf %61, %60 : vector<8x128xf32>
    %cst_45 = arith.constant 1.000000e+00 : f32
    %63 = vector.broadcast %cst_45 : f32 to vector<8x128xf32>
    %64 = arith.divf %63, %62 : vector<8x128xf32>
    %c2_46 = arith.constant 2 : index
    %c0_47 = arith.constant 0 : index
    %c0_48 = arith.constant 0 : index
    %65 = vector.load %arg3[%c2_46, %c0_47, %c0_48] : memref<3x8x128xf32, #tpu.memory_space<vmem>>, vector<1x8x128xf32>
    %66 = vector.shape_cast %65 : vector<1x8x128xf32> to vector<8x128xf32>
    %67 = arith.cmpf ogt, %64, %66 : vector<8x128xf32>
    %68 = arith.extui %67 : vector<8x128xi1> to vector<8x128xi32>
    %69 = arith.sitofp %68 : vector<8x128xi32> to vector<8x128xf32>
    %c2_49 = arith.constant 2 : index
    %c0_50 = arith.constant 0 : index
    %c0_51 = arith.constant 0 : index
    %70 = vector.load %arg4[%c2_49, %c0_50, %c0_51] : memref<3x8x128xf32, #tpu.memory_space<vmem>>, vector<1x8x128xf32>
    %71 = vector.shape_cast %70 : vector<1x8x128xf32> to vector<8x128xf32>
    %72 = vector.shape_cast %57 : vector<8x128xf32> to vector<1x8x128xf32>
    tpu.vector_store %arg4[%c2_49, %c0_50, %c0_51], %72 {strides = array<i32>} : memref<3x8x128xf32, #tpu.memory_space<vmem>>, vector<1x8x128xf32>,
    %c2_52 = arith.constant 2 : index
    %c0_53 = arith.constant 0 : index
    %c0_54 = arith.constant 0 : index
    %73 = vector.load %arg5[%c2_52, %c0_53, %c0_54] : memref<3x8x128xf32, #tpu.memory_space<vmem>>, vector<1x8x128xf32>
    %74 = vector.shape_cast %73 : vector<1x8x128xf32> to vector<8x128xf32>
    %75 = vector.shape_cast %69 : vector<8x128xf32> to vector<1x8x128xf32>
    tpu.vector_store %arg5[%c2_52, %c0_53, %c0_54], %75 {strides = array<i32>} : memref<3x8x128xf32, #tpu.memory_space<vmem>>, vector<1x8x128xf32>,
    return
  }
}

</mosaic_0001>

<bundles_post_ra>
// kernel: tpu_custom_call.1
= control target key start
LH: loop header
LB: loop body
LE: loop exit
PB: predicated region body
PF: predicated region fallthrough
CT: control target
= control target key end

     0   :  { %11 = vsyncpa [#allocation3], 0  ;;  %s954_s0 = inlined_call_operand.hbm [shape: f32[8,128], index: 0, kind: input, shape index: {}]   ;;  %s955_s1 = inlined_call_operand.hbm [shape: f32[3,128,128], index: 1, kind: input, shape index: {}]   ;;  %s956_s2 = inlined_call_operand.vmem [shape: f32[3,1,128], index: 2, kind: input, shape index: {}]   ;;  %s957_s3 = inlined_call_operand.hbm [shape: f32[3,8,128], index: 3, kind: input, shape index: {}]   ;;  %s958_s4 = inlined_call_operand.hbm [shape: f32[3,8,128], index: 4, kind: output, shape index: {0}]   ;;  %s959_s5 = inlined_call_operand.hbm [shape: f32[3,8,128], index: 5, kind: output, shape index: {1}]  }
   0x1   :  { %12 = vsyncpa [#allocation6], 0 }
   0x2   :  { %13 = vsyncpa [#allocation4], 0 }
   0x3   :  { %14 = vsyncpa [#allocation10], 0  ;;  %s799_s18 = smov [#allocation5]   ;;  %s681_s22 = scalar_lea.hbm %s955_s1, 6144 }
   0x4   :  { %s30_s19 = sshll.u32 %s799_s18, 4  ;;  %p682_p0 = scmp.ne.s32.totalorder %s955_s1, %s681_s22  ;;  %s31_s19 = int_to_ptr.vmem [resolvable:$true] %s30_s19 }
   0x5   :  { %p685_p1 = scmp.lt.u32.totalorder %s681_s22, %s955_s1 }
   0x7   :  { %p687_p2 = pnand %p685_p1, %p682_p0 }
   0x9   :  { %690 = shalt.err (!%p687_p2)
}
   0xa   :  { %s691_s27 = scalar_lea.vmem %s31_s19, 6144  ;;  %p696_p4 = scmp.lt.s32.totalorder %s31_s19, %s31_s19 }
   0xb   :  { %p692_p3 = scmp.ne.s32.totalorder %s31_s19, %s691_s27  ;;  %p697_p5 = scmp.lt.s32.totalorder %s691_s27, %s691_s27 }
   0xd   :  { %p698_p6 = por %p697_p5, %p696_p4 }
   0xf   :  { %p699_p7 = pnand %p698_p6, %p692_p3 }
  0x11   :  { %702 = shalt.err (!%p699_p7)
}
  0x12   :  { %s800_s28 = smov 128   ;;  %s801_s29 = smov 8  }
  0x13   :  { %36 = dma.hbm_to_vmem [thread:$0]  %s955_s1, 6144, %s31_s19, [#allocation6], %s800_s28, %s800_s28, %s801_s29  }
  0x14   :  { %s802_s7 = smov [#allocation2]   ;;  %s803_s9 = smov [#allocation7]  }
  0x15   :  { %s21_s8 = sshll.u32 %s802_s7, 4  ;;  %s44_s10 = sshll.u32 %s803_s9, 4  ;;  %s22_s8 = int_to_ptr.vmem [resolvable:$true] %s21_s8  ;;  %s45_s10 = int_to_ptr.vmem [resolvable:$true] %s44_s10 }
  0x16   :  { %s703_s13 = scalar_lea.hbm %s954_s0, 128 }
  0x17   :  { %p704_p8 = scmp.ne.s32.totalorder %s954_s0, %s703_s13  ;;  %p707_p9 = scmp.lt.u32.totalorder %s703_s13, %s954_s0 }
  0x19   :  { %p709_p10 = pnand %p707_p9, %p704_p8 }
  0x1b   :  { %712 = shalt.err (!%p709_p10)
}
  0x1c   :  { %s713_s1 = scalar_lea.vmem %s22_s8, 128  ;;  %p718_p12 = scmp.lt.s32.totalorder %s22_s8, %s22_s8 }
  0x1d   :  { %p714_p11 = scmp.ne.s32.totalorder %s22_s8, %s713_s1  ;;  %p719_p13 = scmp.lt.s32.totalorder %s713_s1, %s713_s1 }
  0x1f   :  { %p720_p0 = por %p719_p13, %p718_p12 }
  0x21   :  { %p721_p1 = pnand %p720_p0, %p714_p11 }
  0x23   :  { %724 = shalt.err (!%p721_p1)
}
  0x24   :  { %24 = dma.hbm_to_vmem [thread:$0]  %s954_s0, 128, %s22_s8, [#allocation3]  }
  0x25   :  { %s725_s22 = scalar_lea.hbm %s957_s3, 384 }
  0x26   :  { %p726_p2 = scmp.ne.s32.totalorder %s957_s3, %s725_s22  ;;  %p729_p3 = scmp.lt.u32.totalorder %s725_s22, %s957_s3 }
  0x28   :  { %p731_p4 = pnand %p729_p3, %p726_p2 }
  0x2a   :  { %734 = shalt.err (!%p731_p4)
}
  0x2b   :  { %s735_s27 = scalar_lea.vmem %s45_s10, 384  ;;  %p740_p6 = scmp.lt.s32.totalorder %s45_s10, %s45_s10 }
  0x2c   :  { %p736_p5 = scmp.ne.s32.totalorder %s45_s10, %s735_s27  ;;  %p741_p7 = scmp.lt.s32.totalorder %s735_s27, %s735_s27 }
  0x2e   :  { %p742_p8 = por %p741_p7, %p740_p6 }
  0x30   :  { %p743_p9 = pnand %p742_p8, %p736_p5 }
  0x32   :  { %746 = shalt.err (!%p743_p9)
}
  0x33   :  { %50 = dma.hbm_to_vmem [thread:$0]  %s957_s3, 384, %s45_s10, [#allocation6], %s800_s28, %s800_s28, %s801_s29  }
  0x34   :  { %791 = dma.done.wait [#allocation3], 128  }
  0x35   :  { %792 = vsyncadd [#allocation3], 4294967168 }
  0x36   :  { %793 = dma.done.wait [#allocation6], 6528  }
  0x37   :  { %794 = vsyncadd [#allocation6], 4294960768  ;;  %v804_v0 = vmov 0.0|0.0   ;;  %vm805_vm0 = vmmov 0   ;;  %v806_v1 = vmov 0.0   ;;  %v61_v2 = vld [vmem:[#allocation5] sm:$0xff] }
  0x38   :  { %586 = vmatprep.subr.bf16.mxu0 %v804_v0  ;;  %513 = vmatprep.mubr.msk.f32.mxu0 %vm805_vm0, %v806_v1  ;;  %v62_v3 = vld [vmem:[#allocation5 + $0x8] sm:$0xff]  ;;  %v63_v4 = vld [vmem:[#allocation5 + $0x10] sm:$0xff]  ;;  %v64_v6 = vld [vmem:[#allocation5 + $0x18] sm:$0xff]  ;;  %v807_v62 = vmov 1.0   ;;  %s808_s11 = smov [#allocation8]  }
  0x39   :  { %610 = vmatprep.subr.bf16.mxu1 %v804_v0  ;;  %548 = vmatprep.mubr.msk.f32.mxu1 %vm805_vm0, %v806_v1  ;;  %v587_v5 = vpack.c.bf16 %v62_v3, %v61_v2  ;;  %v590_v7 = vpack.c.bf16 %v64_v6, %v63_v4  ;;  %v65_v8 = vld [vmem:[#allocation5 + $0x20] sm:$0xff]  ;;  %v66_v9 = vld [vmem:[#allocation5 + $0x28] sm:$0xff]  ;;  %v67_v11 = vld [vmem:[#allocation5 + $0x30] sm:$0xff]  ;;  %s391_s12 = sshll.u32 %s808_s11, 4  ;;  %s392_s12 = int_to_ptr.vmem [resolvable:$true] %s391_s12 }
  0x3a   :  { %v593_v10 = vpack.c.bf16 %v66_v9, %v65_v8  ;;  %v68_v12 = vld [vmem:[#allocation5 + $0x38] sm:$0xff]  ;;  %v69_v14 = vld [vmem:[#allocation5 + $0x40] sm:$0xff]  ;;  %v70_v15 = vld [vmem:[#allocation5 + $0x48] sm:$0xff]  ;;  %s747_s13 = scalar_lea.vmem %s392_s12, 384  ;;  %p752_p11 = scmp.lt.s32.totalorder %s392_s12, %s392_s12 }
  0x3b   :  { %588 = vmatpush3.bf16.msra.mxu0 %v587_v5  ;;  %v596_v13 = vpack.c.bf16 %v68_v12, %v67_v11  ;;  %v599_v16 = vpack.c.bf16 %v70_v15, %v69_v14  ;;  %v71_v17 = vld [vmem:[#allocation5 + $0x50] sm:$0xff]  ;;  %v72_v18 = vld [vmem:[#allocation5 + $0x58] sm:$0xff]  ;;  %v73_v20 = vld [vmem:[#allocation5 + $0x60] sm:$0xff]  ;;  %p748_p10 = scmp.ne.s32.totalorder %s392_s12, %s747_s13  ;;  %p753_p12 = scmp.lt.s32.totalorder %s747_s13, %s747_s13 }
  0x3c   :  { %589 = vmatprep.subr.bf16.mxu0 %v804_v0  ;;  %v602_v19 = vpack.c.bf16 %v72_v18, %v71_v17  ;;  %v74_v21 = vld [vmem:[#allocation5 + $0x68] sm:$0xff]  ;;  %v75_v23 = vld [vmem:[#allocation5 + $0x70] sm:$0xff]  ;;  %v76_v24 = vld [vmem:[#allocation5 + $0x78] sm:$0xff] }
  0x3d   :  { %v605_v22 = vpack.c.bf16 %v74_v21, %v73_v20  ;;  %v608_v25 = vpack.c.bf16 %v76_v24, %v75_v23  ;;  %v60_v26 = vld [vmem:[#allocation2] sm:$0xff]  ;;  %v167_v27 = vld [vmem:[#allocation5 + $0x80] sm:$0xff]  ;;  %v168_v28 = vld [vmem:[#allocation5 + $0x88] sm:$0xff]  ;;  %p754_p13 = por %p753_p12, %p752_p11 }
  0x3e   :  { %v611_v29 = vpack.c.bf16 %v168_v28, %v167_v27  ;;  %v169_v30 = vld [vmem:[#allocation5 + $0x90] sm:$0xff]  ;;  %v170_v31 = vld [vmem:[#allocation5 + $0x98] sm:$0xff]  ;;  %v171_v33 = vld [vmem:[#allocation5 + $0xa0] sm:$0xff] }
  0x3f   :  { %591 = vmatpush3.bf16.msra.mxu0 %v590_v7  ;;  %v614_v32 = vpack.c.bf16 %v170_v31, %v169_v30  ;;  %v172_v34 = vld [vmem:[#allocation5 + $0xa8] sm:$0xff]  ;;  %v173_v36 = vld [vmem:[#allocation5 + $0xb0] sm:$0xff]  ;;  %v174_v37 = vld [vmem:[#allocation5 + $0xb8] sm:$0xff]  ;;  %p755_p0 = pnand %p754_p13, %p748_p10 }
  0x40   :  { %592 = vmatprep.subr.bf16.mxu0 %v804_v0  ;;  %612 = vmatpush3.bf16.msra.mxu1 %v611_v29  ;;  %v617_v35 = vpack.c.bf16 %v172_v34, %v171_v33  ;;  %v620_v38 = vpack.c.bf16 %v174_v37, %v173_v36  ;;  %v175_v39 = vld [vmem:[#allocation5 + $0xc0] sm:$0xff]  ;;  %v176_v40 = vld [vmem:[#allocation5 + $0xc8] sm:$0xff]  ;;  %v177_v42 = vld [vmem:[#allocation5 + $0xd0] sm:$0xff] }
  0x41   :  { %613 = vmatprep.subr.bf16.mxu1 %v804_v0  ;;  %v623_v41 = vpack.c.bf16 %v176_v40, %v175_v39  ;;  %v178_v43 = vld [vmem:[#allocation5 + $0xd8] sm:$0xff]  ;;  %v179_v45 = vld [vmem:[#allocation5 + $0xe0] sm:$0xff]  ;;  %v180_v46 = vld [vmem:[#allocation5 + $0xe8] sm:$0xff] }
  0x42   :  { %v626_v44 = vpack.c.bf16 %v178_v43, %v177_v42  ;;  %v629_v47 = vpack.c.bf16 %v180_v46, %v179_v45  ;;  %v181_v48 = vld [vmem:[#allocation5 + $0xf0] sm:$0xff]  ;;  %v182_v49 = vld [vmem:[#allocation5 + $0xf8] sm:$0xff]  ;;  %v160_v59 = vld [vmem:[#allocation7] sm:$0xff] }
  0x43   :  { %594 = vmatpush3.bf16.msra.mxu0 %v593_v10  ;;  %v632_v50 = vpack.c.bf16 %v182_v49, %v181_v48  ;;  %v420_v51 = vld [vmem:[%s956_s2] ss:$0 sm:$0xff]  ;;  %v277_v63 = vld [vmem:[#allocation5 + $0x100] sm:$0xff]  ;;  %v278_v2 = vld [vmem:[#allocation5 + $0x108] sm:$0xff] }
  0x44   :  { %595 = vmatprep.subr.bf16.mxu0 %v804_v0  ;;  %615 = vmatpush3.bf16.msra.mxu1 %v614_v32  ;;  %v635_v3 = vpack.c.bf16 %v278_v2, %v277_v63  ;;  %v279_v4 = vld [vmem:[#allocation5 + $0x110] sm:$0xff]  ;;  %v280_v5 = vld [vmem:[#allocation5 + $0x118] sm:$0xff]  ;;  %v281_v7 = vld [vmem:[#allocation5 + $0x120] sm:$0xff] }
  0x45   :  { %616 = vmatprep.subr.bf16.mxu1 %v804_v0  ;;  %v638_v6 = vpack.c.bf16 %v280_v5, %v279_v4  ;;  %v282_v8 = vld [vmem:[#allocation5 + $0x128] sm:$0xff]  ;;  %v283_v10 = vld [vmem:[#allocation5 + $0x130] sm:$0xff]  ;;  %v284_v11 = vld [vmem:[#allocation5 + $0x138] sm:$0xff] }
  0x46   :  { %v641_v9 = vpack.c.bf16 %v282_v8, %v281_v7  ;;  %v644_v12 = vpack.c.bf16 %v284_v11, %v283_v10  ;;  %v286_v14 = vld [vmem:[#allocation5 + $0x148] sm:$0xff]  ;;  %v288_v17 = vld [vmem:[#allocation5 + $0x158] sm:$0xff] }
  0x47   :  { %597 = vmatpush3.bf16.msra.mxu0 %v596_v13  ;;  %v285_v13 = vld [vmem:[#allocation5 + $0x140] sm:$0xff]  ;;  %v290_v20 = vld [vmem:[#allocation5 + $0x168] sm:$0xff]  ;;  %v292_v23 = vld [vmem:[#allocation5 + $0x178] sm:$0xff] }
  0x48   :  { %598 = vmatprep.subr.bf16.mxu0 %v804_v0  ;;  %618 = vmatpush3.bf16.msra.mxu1 %v617_v35  ;;  %v647_v15 = vpack.c.bf16 %v286_v14, %v285_v13  ;;  %v268_v33 = vld [vmem:[#allocation7 + $0x8] sm:$0xff]  ;;  %v427_v35 = vld [vmem:[%s956_s2 + $0x2] ss:$0 sm:$0xff] }
  0x49   :  { %619 = vmatprep.subr.bf16.mxu1 %v804_v0 }
  0x4b   :  { %600 = vmatpush3.bf16.msra.mxu0 %v599_v16  ;;  %v287_v16 = vld [vmem:[#allocation5 + $0x150] sm:$0xff] }
  0x4c   :  { %601 = vmatprep.subr.bf16.mxu0 %v804_v0  ;;  %621 = vmatpush3.bf16.msra.mxu1 %v620_v38  ;;  %v650_v18 = vpack.c.bf16 %v288_v17, %v287_v16 }
  0x4d   :  { %622 = vmatprep.subr.bf16.mxu1 %v804_v0 }
  0x4f   :  { %603 = vmatpush3.bf16.msra.mxu0 %v602_v19  ;;  %v289_v19 = vld [vmem:[#allocation5 + $0x160] sm:$0xff] }
  0x50   :  { %604 = vmatprep.subr.bf16.mxu0 %v804_v0  ;;  %624 = vmatpush3.bf16.msra.mxu1 %v623_v41  ;;  %v653_v21 = vpack.c.bf16 %v290_v20, %v289_v19 }
  0x51   :  { %625 = vmatprep.subr.bf16.mxu1 %v804_v0 }
  0x53   :  { %606 = vmatpush3.bf16.msra.mxu0 %v605_v22  ;;  %v291_v22 = vld [vmem:[#allocation5 + $0x170] sm:$0xff] }
  0x54   :  { %607 = vmatprep.subr.bf16.mxu0 %v804_v0  ;;  %627 = vmatpush3.bf16.msra.mxu1 %v626_v44  ;;  %v656_v24 = vpack.c.bf16 %v292_v23, %v291_v22 }
  0x55   :  { %628 = vmatprep.subr.bf16.mxu1 %v804_v0 }
  0x57   :  { %609 = vmatpush3.bf16.msra.mxu0 %v608_v25  ;;  %v423_v25 = vld [vmem:[%s956_s2 + $0x1] ss:$0 sm:$0xff] }
  0x58   :  { %634 = vmatprep.subr.bf16.mxu0 %v804_v0  ;;  %630 = vmatpush3.bf16.msra.mxu1 %v629_v47 }
  0x59   :  { %631 = vmatprep.subr.bf16.mxu1 %v804_v0 }
  0x5a   :  { %514 = vmatmul.mubr.f32.vlgmr.msra.gmra.mrb[0].mxu0 %v60_v26 }
  0x5b   :  { %583 = vmatprep.mubr.msk.f32.mxu0 %vm805_vm0, %v806_v1  ;;  %636 = vmatpush3.bf16.msra.mxu0 %v635_v3 }
  0x5c   :  { %633 = vmatpush3.bf16.msra.mxu1 %v632_v50  ;;  %637 = vmatprep.subr.bf16.mxu0 %v804_v0 }
  0x5f   :  { %639 = vmatpush3.bf16.msra.mxu0 %v638_v6 }
  0x60   :  { %640 = vmatprep.subr.bf16.mxu0 %v804_v0 }
  0x63   :  { %642 = vmatpush3.bf16.msra.mxu0 %v641_v9 }
  0x64   :  { %643 = vmatprep.subr.bf16.mxu0 %v804_v0 }
  0x67   :  { %645 = vmatpush3.bf16.msra.mxu0 %v644_v12 }
  0x68   :  { %646 = vmatprep.subr.bf16.mxu0 %v804_v0 }
  0x6b   :  { %648 = vmatpush3.bf16.msra.mxu0 %v647_v15 }
  0x6c   :  { %649 = vmatprep.subr.bf16.mxu0 %v804_v0 }
  0x6f   :  { %651 = vmatpush3.bf16.msra.mxu0 %v650_v18 }
  0x70   :  { %652 = vmatprep.subr.bf16.mxu0 %v804_v0 }
  0x73   :  { %654 = vmatpush3.bf16.msra.mxu0 %v653_v21 }
  0x74   :  { %655 = vmatprep.subr.bf16.mxu0 %v804_v0 }
  0x77   :  { %657 = vmatpush3.bf16.msra.mxu0 %v656_v24 }
 0x12d   :  { %v150_v52 = vpop.f32.mrb[0].mxu0 }
 0x12e   :  { %v151_v53 = vadd.f32 %v420_v51, %v150_v52  ;;  %v515_v54 = vpop.f32.mrb[1].mxu0 }
 0x130   :  { %v154_v55 = vsub.f32 0.0, %v151_v53  ;;  %164 = vst [vmem:[#allocation8] sm:$0xff] %v151_v53 }
 0x132   :  { %v155_v56 = vmul.f32 1.442695, %v154_v55 }
 0x134   :  { %669 = vpow2.f32 %v155_v56 }
 0x13e   :  { %v670_v57 = vpop.eup %669 }
 0x13f   :  { %v157_v58 = vadd.f32 1.0, %v670_v57 }
 0x141   :  { %671 = vrcp.f32 %v157_v58 }
 0x14b   :  { %v672_v60 = vpop.eup %671 }
 0x14c   :  { %vm161_vm1 = vcmp.gt.f32.partialorder %v672_v60, %v160_v59 }
 0x14d   :  { %v421_v61 = vsel %vm161_vm1, 1.0, %v806_v1  ;;  %549 = vmatmul.mubr.msk.f32.vlgmr.msra.gmra.mrb[0].mxu1 %vm161_vm1, %v807_v62 }
 0x14e   :  { %165 = vst [vmem:[#allocation9] sm:$0xff] %v421_v61 }
 0x220   :  { %v257_v26 = vpop.f32.mrb[0].mxu1 }
 0x221   :  { %v258_v27 = vadd.f32 %v423_v25, %v257_v26  ;;  %v550_v28 = vpop.f32.mrb[1].mxu1 }
 0x223   :  { %v261_v29 = vsub.f32 0.0, %v258_v27  ;;  %273 = vst [vmem:[#allocation8 + $0x8] sm:$0xff] %v258_v27 }
 0x225   :  { %v262_v30 = vmul.f32 1.442695, %v261_v29 }
 0x227   :  { %673 = vpow2.f32 %v262_v30 }
 0x231   :  { %v674_v31 = vpop.eup %673 }
 0x232   :  { %v264_v32 = vadd.f32 1.0, %v674_v31 }
 0x234   :  { %675 = vrcp.f32 %v264_v32 }
 0x23e   :  { %v676_v34 = vpop.eup %675 }
 0x23f   :  { %vm269_vm2 = vcmp.gt.f32.partialorder %v676_v34, %v268_v33 }
 0x240   :  { %584 = vmatmul.mubr.msk.f32.vlgmr.msra.gmra.mrb[2].mxu0 %vm269_vm2, %v807_v62  ;;  %v425_v0 = vsel %vm269_vm2, 1.0, %v806_v1 }
 0x241   :  { %275 = vst [vmem:[#allocation9 + $0x8] sm:$0xff] %v425_v0 }
 0x313   :  { %v367_v36 = vpop.f32.mrb[2].mxu0 }
 0x314   :  { %v368_v37 = vadd.f32 %v427_v35, %v367_v36  ;;  %v585_v38 = vpop.f32.mrb[3].mxu0 }
 0x316   :  { %v371_v39 = vsub.f32 0.0, %v368_v37  ;;  %383 = vst [vmem:[#allocation8 + $0x10] sm:$0xff] %v368_v37 }
 0x317   :  { %758 = shalt.err (!%p755_p0)
}
 0x318   :  { %s759_s16 = scalar_lea.hbm %s958_s4, 384 }
 0x319   :  { %p760_p1 = scmp.ne.s32.totalorder %s958_s4, %s759_s16  ;;  %p763_p2 = scmp.lt.u32.totalorder %s759_s16, %s958_s4 }
 0x31b   :  { %p765_p3 = pnand %p763_p2, %p760_p1 }
 0x31d   :  { %768 = shalt.err (!%p765_p3)
}
 0x31e   :  { %397 = dma.vmem_to_hbm [thread:$0]  %s392_s12, 384, %s958_s4, [#allocation4], %s800_s28, %s800_s28, %s801_s29   ;;  %v372_v40 = vmul.f32 1.442695, %v371_v39  ;;  %v378_v43 = vld [vmem:[#allocation7 + $0x10] sm:$0xff] }
 0x31f   :  { %s809_s21 = smov [#allocation9]  }
 0x320   :  { %677 = vpow2.f32 %v372_v40  ;;  %s403_s22 = sshll.u32 %s809_s21, 4  ;;  %s404_s22 = int_to_ptr.vmem [resolvable:$true] %s403_s22 }
 0x321   :  { %s769_s23 = scalar_lea.vmem %s404_s22, 384  ;;  %p774_p5 = scmp.lt.s32.totalorder %s404_s22, %s404_s22 }
 0x322   :  { %p770_p4 = scmp.ne.s32.totalorder %s404_s22, %s769_s23  ;;  %p775_p6 = scmp.lt.s32.totalorder %s769_s23, %s769_s23 }
 0x324   :  { %p776_p7 = por %p775_p6, %p774_p5 }
 0x326   :  { %p777_p8 = pnand %p776_p7, %p770_p4 }
 0x32a   :  { %v678_v41 = vpop.eup %677 }
 0x32b   :  { %v374_v42 = vadd.f32 1.0, %v678_v41 }
 0x32d   :  { %679 = vrcp.f32 %v374_v42 }
 0x337   :  { %v680_v44 = vpop.eup %679 }
 0x338   :  { %vm379_vm3 = vcmp.gt.f32.partialorder %v680_v44, %v378_v43 }
 0x339   :  { %v429_v45 = vsel %vm379_vm3, 1.0, %v806_v1 }
 0x33a   :  { %385 = vst [vmem:[#allocation9 + $0x10] sm:$0xff] %v429_v45 }
 0x33b   :  { %780 = shalt.err (!%p777_p8)
}
 0x33c   :  { %s781_s25 = scalar_lea.hbm %s959_s5, 384 }
 0x33d   :  { %p782_p9 = scmp.ne.s32.totalorder %s959_s5, %s781_s25  ;;  %p785_p10 = scmp.lt.u32.totalorder %s781_s25, %s959_s5 }
 0x33f   :  { %p787_p11 = pnand %p785_p10, %p782_p9 }
 0x341   :  { %790 = shalt.err (!%p787_p11)
}
 0x342   :  { %409 = dma.vmem_to_hbm [thread:$0]  %s404_s22, 384, %s959_s5, [#allocation10], %s800_s28, %s800_s28, %s801_s29  }
 0x343   :  { %795 = dma.done.wait [#allocation4], 384  }
 0x344   :  { %796 = vsyncadd [#allocation4], 4294966912 }
 0x345   :  { %797 = dma.done.wait [#allocation10], 384  }
 0x346   :  { %798 = vsyncadd [#allocation10], 4294966912 }
 0x347   :  { %416 = vsyncpa [#allocation3], 1 }
 0x348   :  { %417 = vsyncpa [#allocation6], 1 }
 0x349   :  { %418 = vsyncpa [#allocation4], 1 }
 0x34a   :  { %419 = vsyncpa [#allocation10], 1 }

</bundles_post_ra>
